<compile_context>
chip_gen: v7x
topology: tpu7x:2x2x1
jax: 0.10.0
libtpu: 0.0.40
codegen_flags: <defaults>
</compile_context>

<pallas_src>
import jax
import jax.numpy as jnp
from jax.experimental import pallas as pl
from jax.experimental.pallas import tpu as pltpu


def _fused_kernel(x_ref, w_ref, o_ref):
    # x_ref / o_ref: (R, 2*W) f32 in VMEM; w_ref: (2, 2) f32 in SMEM.
    half = x_ref.shape[1] // 2
    x0 = x_ref[:, :half]     # feature h = 0, lane-dense (R, W)
    x1f = x_ref[:, half:]    # feature h = 1, lane-dense (R, W)

    # Four scalar weights from SMEM -> VPU broadcast FMAs (no MXU).
    w00 = w_ref[0, 0]
    w01 = w_ref[0, 1]
    w10 = w_ref[1, 0]
    w11 = w_ref[1, 1]

    # out[..., o] = relu6(x[..., o]) + x[..., 0] * W[o, 0] + x[..., 1] * W[o, 1]
    o_ref[:, :half] = jnp.clip(x0, 0.0, 6.0) + x0 * w00 + x1f * w01
    o_ref[:, half:] = jnp.clip(x1f, 0.0, 6.0) + x0 * w10 + x1f * w11


def model_forward(x1, weight):
    """x1: (B, C, 2, W) float32; weight: (2, 2) float32 (Linear(2,2,bias=False))."""
    b, c, h, w = x1.shape
    assert h == 2 and weight.shape == (2, 2), (
        "F.linear(in_features=2) requires x1.shape[2] == 2 and a (2,2) weight")
    r = b * c
    # Free contiguous reshape: native layout, feature 0 = lanes [0:W],
    # feature 1 = lanes [W:2W].  No pre-kernel transpose.
    x_flat = x1.reshape(r, 2 * w)

    out_flat = pl.pallas_call(
        _fused_kernel,
        out_shape=jax.ShapeDtypeStruct((r, 2 * w), jnp.float32),
        in_specs=[
            pl.BlockSpec(memory_space=pltpu.MemorySpace.VMEM),   # x slab
            pl.BlockSpec(memory_space=pltpu.MemorySpace.SMEM),   # 2x2 weight
        ],
        out_specs=pl.BlockSpec(memory_space=pltpu.MemorySpace.VMEM),
    )(x_flat, weight)

    # Module output = permute(0,3,1,2) applied to x1's layout:
    # (B, C, 2, W) -> (B, W, C, 2).  Done as wrapper-side layout plumbing.
    return jnp.transpose(out_flat.reshape(b, c, 2, w), (0, 3, 1, 2))


if __name__ == "__main__":
    key = jax.random.PRNGKey(0)
    kx, kw = jax.random.split(key)

    # Small shapes consistent with the forward: x1.shape[2] == 2 (the linear's
    # in_features); W = 128 so each feature slab is a full lane-dense (8,128)
    # tile (B*C = 8 rows).
    x1 = jax.random.normal(kx, (2, 4, 2, 128), dtype=jnp.float32)
    # Deterministic "Linear(2, 2, bias=False)" weight (Kaiming-uniform-like range).
    weight = jax.random.uniform(
        kw, (2, 2), dtype=jnp.float32,
        minval=-(1.0 / 2.0) ** 0.5, maxval=(1.0 / 2.0) ** 0.5)

    out = model_forward(x1, weight)
    jax.block_until_ready(out)

    # Pure-JAX reference check.
    v1 = jnp.transpose(x1, (0, 3, 1, 2))
    ref = jnp.clip(v1, 0.0, 6.0) + jnp.einsum("bwch,oh->bwco", v1, weight)
    assert out.shape == ref.shape
    assert jnp.allclose(out, ref, atol=1e-5, rtol=1e-5)

    print("KERNEL_OK")
</pallas_src>

<mosaic_0001>
module attributes {stable_mosaic.version = 11 : i64} {
  func.func @_fused_kernel(%arg0: memref<8x256xf32, #tpu.memory_space<vmem>>, %arg1: memref<2x2xf32, #tpu.memory_space<smem>>, %arg2: memref<8x256xf32, #tpu.memory_space<vmem>>) attributes {dimension_semantics = [], scalar_prefetch = 0 : i64, scratch_operands = 0 : i64, tpu.core_type = #tpu.core_type<tc>} {
    %c0 = arith.constant 0 : index
    %c0_0 = arith.constant 0 : index
    %0 = vector.load %arg0[%c0, %c0_0] : memref<8x256xf32, #tpu.memory_space<vmem>>, vector<8x128xf32>
    %c0_1 = arith.constant 0 : index
    %c128 = arith.constant 128 : index
    %1 = vector.load %arg0[%c0_1, %c128] : memref<8x256xf32, #tpu.memory_space<vmem>>, vector<8x128xf32>
    %c0_2 = arith.constant 0 : index
    %c0_3 = arith.constant 0 : index
    %2 = memref.load %arg1[%c0_2, %c0_3] : memref<2x2xf32, #tpu.memory_space<smem>>
    %c0_4 = arith.constant 0 : index
    %c1 = arith.constant 1 : index
    %3 = memref.load %arg1[%c0_4, %c1] : memref<2x2xf32, #tpu.memory_space<smem>>
    %c1_5 = arith.constant 1 : index
    %c0_6 = arith.constant 0 : index
    %4 = memref.load %arg1[%c1_5, %c0_6] : memref<2x2xf32, #tpu.memory_space<smem>>
    %c1_7 = arith.constant 1 : index
    %c1_8 = arith.constant 1 : index
    %5 = memref.load %arg1[%c1_7, %c1_8] : memref<2x2xf32, #tpu.memory_space<smem>>
    %cst = arith.constant 0.000000e+00 : f32
    %cst_9 = arith.constant 6.000000e+00 : f32
    %6 = vector.broadcast %cst : f32 to vector<8x128xf32>
    %7 = arith.maximumf %6, %0 : vector<8x128xf32>
    %8 = vector.broadcast %cst_9 : f32 to vector<8x128xf32>
    %9 = arith.minimumf %8, %7 : vector<8x128xf32>
    %10 = vector.broadcast %2 : f32 to vector<8x128xf32>
    %11 = arith.mulf %0, %10 : vector<8x128xf32>
    %12 = arith.addf %9, %11 : vector<8x128xf32>
    %13 = vector.broadcast %3 : f32 to vector<8x128xf32>
    %14 = arith.mulf %1, %13 : vector<8x128xf32>
    %15 = arith.addf %12, %14 : vector<8x128xf32>
    %c0_10 = arith.constant 0 : index
    %c0_11 = arith.constant 0 : index
    %16 = vector.load %arg2[%c0_10, %c0_11] : memref<8x256xf32, #tpu.memory_space<vmem>>, vector<8x128xf32>
    tpu.vector_store %arg2[%c0_10, %c0_11], %15 {strides = array<i32>} : memref<8x256xf32, #tpu.memory_space<vmem>>, vector<8x128xf32>,
    %cst_12 = arith.constant 0.000000e+00 : f32
    %cst_13 = arith.constant 6.000000e+00 : f32
    %17 = vector.broadcast %cst_12 : f32 to vector<8x128xf32>
    %18 = arith.maximumf %17, %1 : vector<8x128xf32>
    %19 = vector.broadcast %cst_13 : f32 to vector<8x128xf32>
    %20 = arith.minimumf %19, %18 : vector<8x128xf32>
    %21 = vector.broadcast %4 : f32 to vector<8x128xf32>
    %22 = arith.mulf %0, %21 : vector<8x128xf32>
    %23 = arith.addf %20, %22 : vector<8x128xf32>
    %24 = vector.broadcast %5 : f32 to vector<8x128xf32>
    %25 = arith.mulf %1, %24 : vector<8x128xf32>
    %26 = arith.addf %23, %25 : vector<8x128xf32>
    %c0_14 = arith.constant 0 : index
    %c128_15 = arith.constant 128 : index
    %27 = vector.load %arg2[%c0_14, %c128_15] : memref<8x256xf32, #tpu.memory_space<vmem>>, vector<8x128xf32>
    tpu.vector_store %arg2[%c0_14, %c128_15], %26 {strides = array<i32>} : memref<8x256xf32, #tpu.memory_space<vmem>>, vector<8x128xf32>,
    return
  }
}

</mosaic_0001>

<bundles_post_ra>
// kernel: tpu_custom_call.1
= control target key start
LH: loop header
LB: loop body
LE: loop exit
PB: predicated region body
PF: predicated region fallthrough
CT: control target
= control target key end

     0   :  { %7 = vsyncpa [#allocation3], 0  ;;  %s190_s0 = inlined_call_operand.hbm [shape: f32[8,256], index: 0, kind: input, shape index: {}]   ;;  %s191_s1 = inlined_call_operand.vmem [shape: f32[2,2], index: 1, kind: input, shape index: {}]   ;;  %s192_s2 = inlined_call_operand.hbm [shape: f32[8,256], index: 2, kind: output, shape index: {}]  }
   0x1   :  { %8 = vsyncpa [#allocation5], 0 }
   0x2   :  { %9 = vsyncpa [#allocation4], 0  ;;  %s26_s11 = sshll.u32 %s191_s1, 4  ;;  %s145_s12 = smov [#allocation2]   ;;  %s27_s11 = int_to_ptr.vmem [resolvable:$true] %s26_s11 }
   0x3   :  { %s16_s13 = sshll.u32 %s145_s12, 4  ;;  %s83_s16 = scalar_lea.hbm %s190_s0, 256  ;;  %s17_s13 = int_to_ptr.vmem [resolvable:$true] %s16_s13 }
   0x4   :  { %p84_p0 = scmp.ne.s32.totalorder %s190_s0, %s83_s16  ;;  %p87_p1 = scmp.lt.u32.totalorder %s83_s16, %s190_s0 }
   0x6   :  { %p89_p2 = pnand %p87_p1, %p84_p0 }
   0x8   :  { %92 = shalt.err (!%p89_p2)
}
   0x9   :  { %s93_s21 = scalar_lea.vmem %s17_s13, 256  ;;  %p98_p4 = scmp.lt.s32.totalorder %s17_s13, %s17_s13 }
   0xa   :  { %p94_p3 = scmp.ne.s32.totalorder %s17_s13, %s93_s21  ;;  %p99_p5 = scmp.lt.s32.totalorder %s93_s21, %s93_s21 }
   0xc   :  { %p100_p6 = por %p99_p5, %p98_p4 }
   0xe   :  { %p101_p7 = pnand %p100_p6, %p94_p3 }
  0x10   :  { %104 = shalt.err (!%p101_p7)
}
  0x11   :  { %19 = dma.hbm_to_vmem [thread:$0]  %s190_s0, 256, %s17_s13, [#allocation3]  }
  0x12   :  { %s105_s23 = scalar_lea.vmem %s27_s11, 32  ;;  %p110_p9 = scmp.lt.s32.totalorder %s27_s11, %s27_s11 }
  0x13   :  { %p106_p8 = scmp.ne.s32.totalorder %s27_s11, %s105_s23  ;;  %p111_p10 = scmp.lt.s32.totalorder %s105_s23, %s105_s23 }
  0x15   :  { %p112_p11 = por %p111_p10, %p110_p9 }
  0x17   :  { %p113_p12 = pnand %p112_p11, %p106_p8 }
  0x19   :  { %116 = shalt.err (!%p113_p12)
}
  0x1a   :  { %s146_s24 = smov [#allocation6]  }
  0x1b   :  { %29 = dma.vmem_to_smem %s27_s11, 32, %s146_s24, [#allocation5]  }
  0x1c   :  { %139 = dma.done.wait [#allocation3], 256  }
  0x1d   :  { %140 = vsyncadd [#allocation3], 4294967040 }
  0x1e   :  { %141 = dma.done.wait [#allocation5], 32  }
  0x1f   :  { %142 = vsyncadd [#allocation5], 4294967264 }
  0x20   :  { %36 = sfence }
  0x21   :  { %v37_v0 = vld [vmem:[#allocation2] sm:$0xff]  ;;  %v38_v1 = vld [vmem:[#allocation2 + $0x8] sm:$0xff]  ;;  %s39_s25 = sld [smem:[#allocation6]]  ;;  %s77_s26 = sld [smem:[#allocation6 + $0x1]] }
  0x22   :  { %v43_v2 = vmax.f32 %v37_v0, 0.0  ;;  %s78_s0 = sld [smem:[#allocation6 + $0x80]]  ;;  %s79_s27 = sld [smem:[#allocation6 + $0x81]]  ;;  %v52_v3 = vmax.f32 %v38_v1, 0.0 }
  0x23   :  { %s147_s28 = smov [#allocation7]  }
  0x24   :  { %v44_v4 = vmin.f32 %v43_v2, 6.0  ;;  %v53_v7 = vmin.f32 %v52_v3, 6.0  ;;  %s67_s29 = sshll.u32 %s147_s28, 4  ;;  %s68_s29 = int_to_ptr.vmem [resolvable:$true] %s67_s29 }
  0x25   :  { %s117_s30 = scalar_lea.vmem %s68_s29, 256  ;;  %p122_p0 = scmp.lt.s32.totalorder %s68_s29, %s68_s29 }
  0x26   :  { %p118_p13 = scmp.ne.s32.totalorder %s68_s29, %s117_s30  ;;  %p123_p1 = scmp.lt.s32.totalorder %s117_s30, %s117_s30 }
  0x27   :  { %v45_v5 = vstv %s39_s25  ;;  %v48_v6 = vstv %s77_s26 }
  0x28   :  { %v46_v8 = vmul.f32 %v45_v5, %v37_v0  ;;  %v49_v9 = vmul.f32 %v48_v6, %v38_v1  ;;  %v54_v10 = vstv %s78_s0  ;;  %v57_v11 = vstv %s79_s27  ;;  %p124_p2 = por %p123_p1, %p122_p0 }
  0x29   :  { %v55_v12 = vmul.f32 %v54_v10, %v37_v0  ;;  %v58_v13 = vmul.f32 %v57_v11, %v38_v1 }
  0x2a   :  { %v47_v14 = vadd.f32 %v46_v8, %v44_v4  ;;  %p125_p3 = pnand %p124_p2, %p118_p13 }
  0x2b   :  { %v56_v15 = vadd.f32 %v55_v12, %v53_v7 }
  0x2c   :  { %v50_v16 = vadd.f32 %v49_v9, %v47_v14 }
  0x2d   :  { %v59_v17 = vadd.f32 %v58_v13, %v56_v15 }
  0x2e   :  { %51 = vst [vmem:[#allocation7] sm:$0xff] %v50_v16 }
  0x2f   :  { %60 = vst [vmem:[#allocation7 + $0x8] sm:$0xff] %v59_v17 }
  0x30   :  { %128 = shalt.err (!%p125_p3)
}
  0x31   :  { %s129_s5 = scalar_lea.hbm %s192_s2, 256 }
  0x32   :  { %p130_p4 = scmp.ne.s32.totalorder %s192_s2, %s129_s5  ;;  %p133_p5 = scmp.lt.u32.totalorder %s129_s5, %s192_s2 }
  0x34   :  { %p135_p6 = pnand %p133_p5, %p130_p4 }
  0x36   :  { %138 = shalt.err (!%p135_p6)
}
  0x37   :  { %70 = dma.vmem_to_hbm [thread:$0]  %s68_s29, 256, %s192_s2, [#allocation4]  }
  0x38   :  { %143 = dma.done.wait [#allocation4], 256  }
  0x39   :  { %144 = vsyncadd [#allocation4], 4294967040 }
  0x3a   :  { %74 = vsyncpa [#allocation3], 1 }
  0x3b   :  { %75 = vsyncpa [#allocation4], 1 }
  0x3c   :  { %76 = vsyncpa [#allocation5], 1 }

</bundles_post_ra>
